<compile_context>
chip_gen: v6e
topology: v6e:2x2x1
jax: 0.10.0
libtpu: 0.0.40
codegen_flags: <defaults>
</compile_context>

<pallas_src>
import functools

import jax
import jax.numpy as jnp
from jax.experimental import pallas as pl
from jax.experimental.pallas import tpu as pltpu

_EPS = 1e-5
_BLOCK_BYTES_BUDGET = 4 << 20    # per-x-block budget for the streaming path
_VMEM_LIMIT_BYTES = 48 << 20     # scoped VMEM request (safe on v5e/v6e/v7x)
_FUSED_VMEM_GATE = 40 << 20      # max estimated VMEM for the fused path


# ---------------------------------------------------------------------------
# Kernels
# ---------------------------------------------------------------------------
def _bn2d_fused_kernel(x_ref, gamma_ref, beta_ref, o_ref, *, m, eps):
    """Single-pass BN on a resident (N, tc, L) slab: stats + fold + apply."""
    n = x_ref.shape[0]

    # --- stats over (N, L) for this channel tile (reads VMEM slab only) ----
    v0 = x_ref[0].astype(jnp.float32)                      # (tc, L)
    acc_s = v0
    acc_q = v0 * v0
    for i in range(1, n):                                  # small static loop
        v = x_ref[i].astype(jnp.float32)
        acc_s = acc_s + v
        acc_q = acc_q + v * v
    s = jnp.sum(acc_s, axis=-1, keepdims=True)             # (tc, 1)
    sq = jnp.sum(acc_q, axis=-1, keepdims=True)            # (tc, 1)

    inv_m = 1.0 / m
    mean = s * inv_m
    var = jnp.maximum(sq * inv_m - mean * mean, 0.0)       # biased var, clamp
    inv_std = jax.lax.rsqrt(var + eps)
    scale = gamma_ref[...] * inv_std                       # (tc, 1)
    shift = beta_ref[...] - mean * scale                   # (tc, 1)

    # --- apply: second read of the resident slab, write the output slab ----
    for i in range(n):
        xi = x_ref[i].astype(jnp.float32)
        o_ref[i] = (xi * scale + shift).astype(o_ref.dtype)


def _bn2d_stats_kernel(x_ref, sum_ref, sq_ref, acc_s, acc_q):
    """Accumulate per-channel sum / sum-of-squares over the (N, L) grid axes.

    Partial sums stay lane-parallel in (tc, 128) scratch; the cross-lane
    reduce + narrow (tc, 1) store only happens at the last reduction step.
    """
    ni, li = pl.program_id(1), pl.program_id(2)
    first = (ni == 0) & (li == 0)
    last = ((ni == pl.num_programs(1) - 1) & (li == pl.num_programs(2) - 1))

    @pl.when(first)
    def _():
        acc_s[...] = jnp.zeros_like(acc_s)
        acc_q[...] = jnp.zeros_like(acc_q)

    tl = x_ref.shape[-1]
    if acc_s.shape[-1] == 128 and tl % 128 == 0:
        # lane-parallel fold: pure VPU adds per 128-lane strip of the block.
        nseg = tl // 128

        def body(i, carry):
            ps, pq = carry
            off = pl.multiple_of(i * 128, 128)
            v = x_ref[0, :, pl.ds(off, 128)].astype(jnp.float32)   # (tc, 128)
            return ps + v, pq + v * v

        z = jnp.zeros(acc_s.shape, jnp.float32)
        ps, pq = jax.lax.fori_loop(0, nseg, body, (z, z),
                                   unroll=min(nseg, 8))
        acc_s[...] += ps
        acc_q[...] += pq
    else:
        # non-128-aligned spatial fallback: per-block cross-lane reduce.
        x = x_ref[0].astype(jnp.float32)                            # (tc, tl)
        acc_s[...] += jnp.sum(x, axis=-1, keepdims=True)
        acc_q[...] += jnp.sum(x * x, axis=-1, keepdims=True)

    @pl.when(last)
    def _():
        sum_ref[...] = jnp.sum(acc_s[...], axis=-1, keepdims=True)
        sq_ref[...] = jnp.sum(acc_q[...], axis=-1, keepdims=True)


def _bn2d_apply_kernel(x_ref, scale_ref, shift_ref, o_ref):
    """y = x * scale + shift (per-channel scale/shift precomputed)."""
    x = x_ref[0].astype(jnp.float32)                        # (tc, tl)
    o_ref[0] = (x * scale_ref[...] + shift_ref[...]).astype(o_ref.dtype)


# ---------------------------------------------------------------------------
# Tile selection (dtype-aware)
# ---------------------------------------------------------------------------
def _pick_channel_tile(c, itemsize, max_tile=32):
    """Channel tile: multiple of the native sublane pack dividing C; prefer
    >= 2 channel blocks so the 'parallel' channel axis can shard across
    TensorCores (v7x megacore)."""
    pack = max(8, 32 // itemsize)          # 8 f32 / 16 bf16 / 32 int8|fp8
    if c % pack != 0:
        return c                           # full-dim fallback (allowed)
    cap = min(max_tile, c)
    if c >= 2 * pack:
        cap = min(cap, c // 2)             # guarantee >= 2 channel blocks
    t = max(cap - (cap % pack), pack)
    while c % t != 0:
        t -= pack
    return t


def _pick_spatial_tile(l, tc, itemsize, budget_bytes=_BLOCK_BYTES_BUDGET):
    """Spatial tile: multiple of 128 dividing L, sized to the VMEM budget.
    If H*W is not a multiple of 128 fall back to the full row (masked tail)."""
    if l % 128 != 0:
        return l
    t_max = max(128, budget_bytes // (tc * itemsize))
    t = min(l, t_max)
    t -= t % 128
    while l % t != 0:
        t -= 128
    return t


# ---------------------------------------------------------------------------
# Wrapper
# ---------------------------------------------------------------------------
def bn2d_forward(x_nchw, gamma, beta, eps=_EPS, force_streaming=False):
    """BatchNorm2d (training-mode batch stats) on an NCHW input."""
    n, c, h, w = x_nchw.shape
    l = h * w
    m = n * l                                # elements per channel
    itemsize = jnp.dtype(x_nchw.dtype).itemsize
    x3 = x_nchw.reshape(n, c, l)             # free reshape, no data movement

    tc = _pick_channel_tile(c, itemsize)
    g = gamma.astype(jnp.float32).reshape(c, 1)
    b = beta.astype(jnp.float32).reshape(c, 1)

    # ---- fused resident-slab path: 2x HBM traffic instead of 3x -----------
    slab_bytes = n * tc * l * itemsize
    fused_vmem = 4 * slab_bytes + 4 * tc * l * 4   # 2x in + 2x out + f32 temps
    if (not force_streaming) and fused_vmem <= _FUSED_VMEM_GATE:
        x_spec = pl.BlockSpec((n, tc, l), lambda ci: (0, ci, 0))
        vec_spec = pl.BlockSpec((tc, 1), lambda ci: (ci, 0))
        kern = functools.partial(_bn2d_fused_kernel, m=float(m), eps=float(eps))
        y3 = pl.pallas_call(
            kern,
            out_shape=jax.ShapeDtypeStruct((n, c, l), x_nchw.dtype),
            grid=(c // tc,),
            in_specs=[x_spec, vec_spec, vec_spec],
            out_specs=x_spec,
            compiler_params=pltpu.CompilerParams(
                dimension_semantics=("parallel",),
                vmem_limit_bytes=_VMEM_LIMIT_BYTES),
            cost_estimate=pl.CostEstimate(
                flops=5 * n * c * l,
                transcendentals=0,
                bytes_accessed=2 * n * c * l * itemsize + 2 * c * 4),
        )(x3, g, b)
        return y3.reshape(n, c, h, w)

    # ---- streaming path (two pipelined passes) ----------------------------
    tl = _pick_spatial_tile(l, tc, itemsize)
    grid = (c // tc, n, l // tl)
    acc_w = 128 if tl % 128 == 0 else 1

    x_spec = pl.BlockSpec((1, tc, tl), lambda ci, ni, li: (ni, ci, li))
    vec_spec = pl.BlockSpec((tc, 1), lambda ci, ni, li: (ci, 0))

    # pass 1: per-channel sum / sum-of-squares (reduction over N, L)
    sums, sqs = pl.pallas_call(
        _bn2d_stats_kernel,
        out_shape=(jax.ShapeDtypeStruct((c, 1), jnp.float32),
                   jax.ShapeDtypeStruct((c, 1), jnp.float32)),
        grid=grid,
        in_specs=[x_spec],
        out_specs=(vec_spec, vec_spec),
        scratch_shapes=[pltpu.VMEM((tc, acc_w), jnp.float32),
                        pltpu.VMEM((tc, acc_w), jnp.float32)],
        compiler_params=pltpu.CompilerParams(
            dimension_semantics=("parallel", "arbitrary", "arbitrary"),
            vmem_limit_bytes=_VMEM_LIMIT_BYTES),
        cost_estimate=pl.CostEstimate(
            flops=3 * n * c * l,
            transcendentals=0,
            bytes_accessed=n * c * l * itemsize + 2 * c * 4),
    )(x3)

    # fold stats + affine into per-channel scale / shift (tiny, in XLA)
    mean = sums[:, 0] / m
    var = jnp.maximum(sqs[:, 0] / m - mean * mean, 0.0)     # biased var, clamp
    inv_std = jax.lax.rsqrt(var + eps)
    gf = g[:, 0]
    bf = b[:, 0]
    scale = (gf * inv_std).reshape(c, 1)
    shift = (bf - mean * gf * inv_std).reshape(c, 1)

    # pass 2: stream x and apply y = x * scale + shift
    y3 = pl.pallas_call(
        _bn2d_apply_kernel,
        out_shape=jax.ShapeDtypeStruct((n, c, l), x_nchw.dtype),
        grid=grid,
        in_specs=[x_spec, vec_spec, vec_spec],
        out_specs=x_spec,
        compiler_params=pltpu.CompilerParams(
            dimension_semantics=("parallel", "parallel", "parallel"),
            vmem_limit_bytes=_VMEM_LIMIT_BYTES),
        cost_estimate=pl.CostEstimate(
            flops=2 * n * c * l,
            transcendentals=0,
            bytes_accessed=2 * n * c * l * itemsize + 2 * c * 4),
    )(x3, scale, shift)

    return y3.reshape(n, c, h, w)


class BN2dPallas:
    """Mirror of APNet BN2d: BatchNorm2d with weight=1, bias=0 (kaiming init)."""

    def __init__(self, planes):
        # weights_init_kaiming: BatchNorm -> weight = 1.0, bias = 0.0
        self.weight = jnp.ones((planes,), dtype=jnp.float32)
        self.bias = jnp.zeros((planes,), dtype=jnp.float32)

    def __call__(self, x):
        return bn2d_forward(x, self.weight, self.bias)


if __name__ == "__main__":
    def ref_bn(x):
        mean = jnp.mean(x, axis=(0, 2, 3), keepdims=True)
        var = jnp.mean((x - mean) ** 2, axis=(0, 2, 3), keepdims=True)
        return (x - mean) / jnp.sqrt(var + _EPS)

    key = jax.random.PRNGKey(0)

    # primary shape from the module spec
    N, C, H, W = 2, 4, 16, 16
    x = jax.random.normal(key, (N, C, H, W), dtype=jnp.float32)
    model = BN2dPallas(C)

    y = jax.block_until_ready(model(x))                    # fused slab path
    assert y.shape == (N, C, H, W)
    assert jnp.max(jnp.abs(y - ref_bn(x))) < 1e-4

    y2 = jax.block_until_ready(                            # streaming path
        bn2d_forward(x, model.weight, model.bias, force_streaming=True))
    assert jnp.max(jnp.abs(y2 - ref_bn(x))) < 1e-4

    # non-128-aligned spatial + multi-channel-block shape (fallback coverage)
    x3 = jax.random.normal(jax.random.PRNGKey(1), (2, 16, 10, 10),
                           dtype=jnp.float32)
    model3 = BN2dPallas(16)
    y3 = jax.block_until_ready(model3(x3))
    assert jnp.max(jnp.abs(y3 - ref_bn(x3))) < 1e-4
    y4 = jax.block_until_ready(
        bn2d_forward(x3, model3.weight, model3.bias, force_streaming=True))
    assert jnp.max(jnp.abs(y4 - ref_bn(x3))) < 1e-4

    print("KERNEL_OK")
</pallas_src>

<mosaic_0001>
module attributes {stable_mosaic.version = 11 : i64} {
  func.func @_bn2d_fused_kernel(%arg0: i32, %arg1: memref<2x4x256xf32, #tpu.memory_space<vmem>>, %arg2: memref<4x1xf32, #tpu.memory_space<vmem>>, %arg3: memref<4x1xf32, #tpu.memory_space<vmem>>, %arg4: memref<2x4x256xf32, #tpu.memory_space<vmem>>) attributes {dimension_semantics = [#tpu.dimension_semantics<parallel>], iteration_bounds = array<i64: 1>, scalar_prefetch = 0 : i64, scratch_operands = 0 : i64, tpu.core_type = #tpu.core_type<tc>, window_params = [{transform_indices = @transform_0, window_bounds = array<i64: 2, 4, 256>}, {transform_indices = @transform_1, window_bounds = array<i64: 4, 1>}, {transform_indices = @transform_2, window_bounds = array<i64: 4, 1>}, {transform_indices = @transform_3, window_bounds = array<i64: 2, 4, 256>}]} {
    %c0 = arith.constant 0 : index
    %c0_0 = arith.constant 0 : index
    %c0_1 = arith.constant 0 : index
    %0 = vector.load %arg1[%c0, %c0_0, %c0_1] : memref<2x4x256xf32, #tpu.memory_space<vmem>>, vector<1x4x256xf32>
    %1 = vector.shape_cast %0 : vector<1x4x256xf32> to vector<4x256xf32>
    %2 = arith.mulf %1, %1 : vector<4x256xf32>
    %c1 = arith.constant 1 : index
    %c0_2 = arith.constant 0 : index
    %c0_3 = arith.constant 0 : index
    %3 = vector.load %arg1[%c1, %c0_2, %c0_3] : memref<2x4x256xf32, #tpu.memory_space<vmem>>, vector<1x4x256xf32>
    %4 = vector.shape_cast %3 : vector<1x4x256xf32> to vector<4x256xf32>
    %5 = arith.addf %1, %4 : vector<4x256xf32>
    %6 = arith.mulf %4, %4 : vector<4x256xf32>
    %7 = arith.addf %2, %6 : vector<4x256xf32>
    %cst = arith.constant dense<0.000000e+00> : vector<4xf32>
    %8 = vector.multi_reduction <add>, %5, %cst [1] : vector<4x256xf32> to vector<4xf32>
    %9 = vector.shape_cast %8 : vector<4xf32> to vector<4x1xf32>
    %cst_4 = arith.constant dense<0.000000e+00> : vector<4xf32>
    %10 = vector.multi_reduction <add>, %7, %cst_4 [1] : vector<4x256xf32> to vector<4xf32>
    %11 = vector.shape_cast %10 : vector<4xf32> to vector<4x1xf32>
    %cst_5 = arith.constant 0.001953125 : f32
    %12 = vector.broadcast %cst_5 : f32 to vector<4x1xf32>
    %13 = arith.mulf %9, %12 : vector<4x1xf32>
    %cst_6 = arith.constant 0.001953125 : f32
    %14 = vector.broadcast %cst_6 : f32 to vector<4x1xf32>
    %15 = arith.mulf %11, %14 : vector<4x1xf32>
    %16 = arith.mulf %13, %13 : vector<4x1xf32>
    %17 = arith.subf %15, %16 : vector<4x1xf32>
    %cst_7 = arith.constant 0.000000e+00 : f32
    %18 = vector.broadcast %cst_7 : f32 to vector<4x1xf32>
    %19 = arith.maximumf %17, %18 : vector<4x1xf32>
    %cst_8 = arith.constant 9.99999974E-6 : f32
    %20 = vector.broadcast %cst_8 : f32 to vector<4x1xf32>
    %21 = arith.addf %19, %20 : vector<4x1xf32>
    %22 = math.rsqrt %21 : vector<4x1xf32>
    %c0_9 = arith.constant 0 : index
    %c0_10 = arith.constant 0 : index
    %23 = vector.load %arg2[%c0_9, %c0_10] : memref<4x1xf32, #tpu.memory_space<vmem>>, vector<4x1xf32>
    %24 = arith.mulf %23, %22 : vector<4x1xf32>
    %c0_11 = arith.constant 0 : index
    %c0_12 = arith.constant 0 : index
    %25 = vector.load %arg3[%c0_11, %c0_12] : memref<4x1xf32, #tpu.memory_space<vmem>>, vector<4x1xf32>
    %26 = arith.mulf %13, %24 : vector<4x1xf32>
    %27 = arith.subf %25, %26 : vector<4x1xf32>
    %c0_13 = arith.constant 0 : index
    %c0_14 = arith.constant 0 : index
    %c0_15 = arith.constant 0 : index
    %28 = vector.load %arg1[%c0_13, %c0_14, %c0_15] : memref<2x4x256xf32, #tpu.memory_space<vmem>>, vector<1x4x256xf32>
    %29 = vector.shape_cast %28 : vector<1x4x256xf32> to vector<4x256xf32>
    %30 = vector.broadcast %24 : vector<4x1xf32> to vector<4x256xf32>
    %31 = arith.mulf %29, %30 : vector<4x256xf32>
    %32 = vector.broadcast %27 : vector<4x1xf32> to vector<4x256xf32>
    %33 = arith.addf %31, %32 : vector<4x256xf32>
    %c0_16 = arith.constant 0 : index
    %c0_17 = arith.constant 0 : index
    %c0_18 = arith.constant 0 : index
    %34 = vector.load %arg4[%c0_16, %c0_17, %c0_18] : memref<2x4x256xf32, #tpu.memory_space<vmem>>, vector<1x4x256xf32>
    %35 = vector.shape_cast %34 : vector<1x4x256xf32> to vector<4x256xf32>
    %36 = vector.shape_cast %33 : vector<4x256xf32> to vector<1x4x256xf32>
    tpu.vector_store %arg4[%c0_16, %c0_17, %c0_18], %36 {strides = array<i32>} : memref<2x4x256xf32, #tpu.memory_space<vmem>>, vector<1x4x256xf32>,
    %c1_19 = arith.constant 1 : index
    %c0_20 = arith.constant 0 : index
    %c0_21 = arith.constant 0 : index
    %37 = vector.load %arg1[%c1_19, %c0_20, %c0_21] : memref<2x4x256xf32, #tpu.memory_space<vmem>>, vector<1x4x256xf32>
    %38 = vector.shape_cast %37 : vector<1x4x256xf32> to vector<4x256xf32>
    %39 = vector.broadcast %24 : vector<4x1xf32> to vector<4x256xf32>
    %40 = arith.mulf %38, %39 : vector<4x256xf32>
    %41 = vector.broadcast %27 : vector<4x1xf32> to vector<4x256xf32>
    %42 = arith.addf %40, %41 : vector<4x256xf32>
    %c1_22 = arith.constant 1 : index
    %c0_23 = arith.constant 0 : index
    %c0_24 = arith.constant 0 : index
    %43 = vector.load %arg4[%c1_22, %c0_23, %c0_24] : memref<2x4x256xf32, #tpu.memory_space<vmem>>, vector<1x4x256xf32>
    %44 = vector.shape_cast %43 : vector<1x4x256xf32> to vector<4x256xf32>
    %45 = vector.shape_cast %42 : vector<4x256xf32> to vector<1x4x256xf32>
    tpu.vector_store %arg4[%c1_22, %c0_23, %c0_24], %45 {strides = array<i32>} : memref<2x4x256xf32, #tpu.memory_space<vmem>>, vector<1x4x256xf32>,
    return
  }
  func.func @transform_0(%arg0: i32) -> (i32, i32, i32) {
    %c0_i32 = arith.constant 0 : i32
    %c0_i32_0 = arith.constant 0 : i32
    %c0_i32_1 = arith.constant 0 : i32
    return %c0_i32, %arg0, %c0_i32_0 : i32, i32, i32
  }
  func.func @transform_1(%arg0: i32) -> (i32, i32) {
    %c0_i32 = arith.constant 0 : i32
    %c0_i32_0 = arith.constant 0 : i32
    return %arg0, %c0_i32 : i32, i32
  }
  func.func @transform_2(%arg0: i32) -> (i32, i32) {
    %c0_i32 = arith.constant 0 : i32
    %c0_i32_0 = arith.constant 0 : i32
    return %arg0, %c0_i32 : i32, i32
  }
  func.func @transform_3(%arg0: i32) -> (i32, i32, i32) {
    %c0_i32 = arith.constant 0 : i32
    %c0_i32_0 = arith.constant 0 : i32
    %c0_i32_1 = arith.constant 0 : i32
    return %c0_i32, %arg0, %c0_i32_0 : i32, i32, i32
  }
}

</mosaic_0001>

<bundles_post_ra>
// kernel: tpu_custom_call.1
= control target key start
LH: loop header
LB: loop body
LE: loop exit
PB: predicated region body
PF: predicated region fallthrough
CT: control target
= control target key end

     0   :  { %8 = vsyncpa [#allocation3], 0  ;;  %s212_s0 = inlined_call_operand.hbm [shape: f32[2,4,256], index: 0, kind: input, shape index: {}]   ;;  %s213_s1 = inlined_call_operand.vmem [shape: f32[4,1], index: 1, kind: input, shape index: {}]   ;;  %s214_s2 = inlined_call_operand.vmem [shape: f32[4,1], index: 2, kind: input, shape index: {}]   ;;  %s215_s3 = inlined_call_operand.hbm [shape: f32[2,4,256], index: 3, kind: output, shape index: {}]  }
   0x1   :  { %9 = vsyncpa [#allocation4], 0  ;;  %s168_s12 = smov [#allocation2]  }
   0x2   :  { %s15_s13 = sshll.u32 %s168_s12, 4  ;;  %s16_s13 = int_to_ptr.vmem [resolvable:$true] %s15_s13 }
   0x3   :  { %s132_s14 = scalar_lea.vmem %s16_s13, 256  ;;  %p137_p1 = scmp.lt.s32.totalorder %s16_s13, %s16_s13 }
   0x4   :  { %p133_p0 = scmp.ne.s32.totalorder %s16_s13, %s132_s14  ;;  %p138_p2 = scmp.lt.s32.totalorder %s132_s14, %s132_s14 }
   0x6   :  { %p139_p3 = por %p138_p2, %p137_p1 }
   0x8   :  { %p140_p4 = pnand %p139_p3, %p133_p0 }
   0xa   :  { %143 = shalt.err (!%p140_p4)
}
   0xb   :  { %s169_s15 = smov 128   ;;  %s170_s16 = smov 8  }
   0xc   :  { %21 = dma.hbm_to_vmem [thread:$0]  %s212_s0, 256, %s16_s13, [#allocation3], %s169_s15, %s169_s15, %s170_s16  }
   0xd   :  { %164 = dma.done.wait [#allocation3], 256  }
   0xe   :  { %165 = vsyncadd [#allocation3], 4294967040  ;;  %v29_v0 = vld [vmem:[#allocation2] sm:$0xff]  ;;  %v32_v1 = vld [vmem:[#allocation2 + $0x8] sm:$0xff]  ;;  %vm39_vm0 = vcmask 1043456   ;;  %v171_v14 = vmov 0   ;;  %v72_v31 = vlaneseq }
   0xf   :  { %v33_v2 = vadd.f32 %v32_v1, %v29_v0  ;;  %v34_v3 = vmul.f32 %v32_v1, %v32_v1  ;;  %v30_v4 = vmul.f32 %v29_v0, %v29_v0  ;;  %120 = vset.pattern.permute.xlu1 %v171_v14  ;;  %121 = vset.pattern.permute.xlu0 %v171_v14  ;;  %v60_v23 = vld [vmem:[%s213_s1] sm:$0xf]  ;;  %v172_v29 = vmov 839922192   ;;  %s173_s1 = smov [#allocation5]  }
  0x10   :  { %v62_v26 = vld [vmem:[%s214_s2] sm:$0xf]  ;;  %v70_v30 = vunpack.c.l.s4 %v172_v29  ;;  %v73_v33 = vshrl.u32 %v72_v31, 7  ;;  %s102_s22 = sshll.u32 %s173_s1, 4  ;;  %s103_s22 = int_to_ptr.vmem [resolvable:$true] %s102_s22 }
  0x11   :  { %v37_v5 = vcombine.high %v33_v2, %v33_v2  ;;  %v40_v6 = vsel %vm39_vm0, %v33_v2, 0.0  ;;  %v35_v7 = vadd.f32 %v34_v3, %v30_v4  ;;  %s144_s2 = scalar_lea.vmem %s103_s22, 256  ;;  %p149_p6 = scmp.lt.s32.totalorder %s103_s22, %s103_s22 }
  0x12   :  { %v71_v32 = vunpack.c.0.s8 %v70_v30  ;;  %p145_p5 = scmp.ne.s32.totalorder %s103_s22, %s144_s2  ;;  %p150_p7 = scmp.lt.s32.totalorder %s144_s2, %s144_s2 }
  0x13   :  { %v41_v8 = vsel %vm39_vm0, %v37_v5, 0.0  ;;  %v46_v9 = vcombine.high %v35_v7, %v35_v7  ;;  %v48_v10 = vsel %vm39_vm0, %v35_v7, 0.0 }
  0x14   :  { %v42_v11 = vadd.f32 %v41_v8, %v40_v6  ;;  %v74_v34 = vsub.s32 %v71_v32, %v73_v33  ;;  %p151_p8 = por %p150_p7, %p149_p6 }
  0x15   :  { %v49_v12 = vsel %vm39_vm0, %v46_v9, 0.0 }
  0x16   :  { %43 = vadd.xlane.f32.xlu0 %v42_v11  ;;  %v50_v13 = vadd.f32 %v49_v12, %v48_v10  ;;  %p152_p9 = pnand %p151_p8, %p145_p5 }
  0x1a   :  { %51 = vadd.xlane.f32.xlu0 %v50_v13 }
  0x9f   :  { %v44_v15 = vpop.xlane.xlu0 %43 }
  0xa0   :  { %v53_v16 = vmul.f32 0.001953125, %v44_v15 }
  0xa2   :  { %v55_v18 = vmul.f32 %v53_v16, %v53_v16 }
  0xa3   :  { %v52_v17 = vpop.xlane.xlu0 %51 }
  0xa4   :  { %v54_v19 = vmul.f32 0.001953125, %v52_v17 }
  0xa6   :  { %v56_v20 = vsub.f32 %v54_v19, %v55_v18 }
  0xa8   :  { %v57_v21 = vmax.f32 %v56_v20, 0.0 }
  0xaa   :  { %v58_v22 = vadd.f32 1e-05, %v57_v21 }
  0xac   :  { %122 = vrsqrt.f32 %v58_v22 }
  0xb9   :  { %v123_v24 = vpop.eup %122 }
  0xba   :  { %v61_v25 = vmul.f32 %v123_v24, %v60_v23 }
  0xbc   :  { %67 = vperm.xlu1 %120, %v61_v25   ;;  %v63_v27 = vmul.f32 %v61_v25, %v53_v16 }
  0xbe   :  { %v64_v28 = vsub.f32 %v62_v26, %v63_v27 }
  0xc0   :  { %80 = vperm.xlu1 %120, %v64_v28  }
 0x137   :  { %v68_v35 = vpop.permute.xlu1 %67 }
 0x138   :  { %v75_v36 = vrot.slane %v68_v35, %v74_v34 }
 0x13a   :  { %v77_v38 = vmul.f32 %v75_v36, %v29_v0  ;;  %v93_v39 = vmul.f32 %v75_v36, %v32_v1 }
 0x13b   :  { %v81_v37 = vpop.permute.xlu1 %80 }
 0x13c   :  { %v88_v40 = vrot.slane %v81_v37, %v74_v34 }
 0x13e   :  { %v90_v41 = vadd.f32 %v88_v40, %v77_v38  ;;  %v94_v42 = vadd.f32 %v93_v39, %v88_v40 }
 0x140   :  { %91 = vst [vmem:[#allocation5] sm:$0xff] %v90_v41  ;;  %96 = vst [vmem:[#allocation5 + $0x8] sm:$0xff] %v94_v42 }
 0x141   :  { %155 = shalt.err (!%p152_p9)
}
 0x142   :  { %108 = dma.vmem_to_hbm [thread:$0]  %s103_s22, 256, %s215_s3, [#allocation4], %s169_s15, %s169_s15, %s170_s16  }
 0x143   :  { %166 = dma.done.wait [#allocation4], 256  }
 0x144   :  { %167 = vsyncadd [#allocation4], 4294967040 }
 0x145   :  { %112 = vsyncpa [#allocation3], 1 }
 0x146   :  { %113 = vsyncpa [#allocation4], 1 }

</bundles_post_ra>
